<compile_context>
chip_gen: v5e
topology: v5e:2x2
jax: 0.10.0
libtpu: 0.0.40
codegen_flags: <defaults>
</compile_context>

<pallas_src>
import functools

import jax
import jax.numpy as jnp
from jax.experimental import pallas as pl
from jax.experimental.pallas import tpu as pltpu


def _agcn_kernel(x_ref, nv1_ref, nv2_ref, w_ref, emb_rep_ref, sel_ref, out_ref,
                 *, cheb_k):
    # ---- adaptive adjacency: A = softmax(relu(nodevec1 @ nodevec2), axis=1) ----
    logits = jnp.dot(nv1_ref[...], nv2_ref[...], preferred_element_type=jnp.float32)
    logits = jnp.maximum(logits, 0.0)
    logits = logits - jnp.max(logits, axis=1, keepdims=True)
    e = jnp.exp(logits)
    inv_rowsum = pl.reciprocal(jnp.sum(e, axis=1, keepdims=True), approx=False)
    a = e * inv_rowsum                                           # (N, N), rows sum to 1

    # ---- Chebyshev propagation directly on the ones-augmented, lane-packed x and
    #      accumulation of Y against the batch-block-diagonal weight slabs.
    #      The trailing "ones" column propagates harmlessly (only W_0 has a nonzero
    #      bias row there; W_{k>=1} have zeros). ----
    g_pp = x_ref[...]                                            # (N, B*C_in + 1)
    y = jnp.dot(g_pp, w_ref[0], preferred_element_type=jnp.float32)   # (N, B*D*C_out)
    g_p = jnp.dot(a, g_pp, preferred_element_type=jnp.float32)        # T_1 x
    y = y + jnp.dot(g_p, w_ref[1], preferred_element_type=jnp.float32)
    if cheb_k > 2:
        two_a = a + a                                            # hoisted out of loop
        for k in range(2, cheb_k):
            g = jnp.dot(two_a, g_p, preferred_element_type=jnp.float32) - g_pp
            y = y + jnp.dot(g, w_ref[k], preferred_element_type=jnp.float32)
            g_pp, g_p = g_p, g

    # ---- per-node embedding weighting + d-reduction as a selector matmul (MXU) ----
    z = emb_rep_ref[...] * y                                     # (N, B*D*C_out)
    out_ref[...] = jnp.dot(z, sel_ref[...],
                           preferred_element_type=jnp.float32)   # (N, B*C_out)


def agcn_prepare(node_embeddings, weights_pool, bias_pool, batch):
    """Parameter-derived prep, hoisted out of the per-call path (call once)."""
    d, k, c_in, c_out = weights_pool.shape
    n, d2 = node_embeddings.shape
    assert d2 == d and bias_pool.shape == (d, c_out)
    assert k >= 2  # the PyTorch module always seeds support_set with [I, A]

    # W_k[(b,i), (b',d,o)] = delta(b,b') * weights_pool[d,k,i,o],
    # plus a trailing row carrying the (batch-replicated) bias for k == 0 only.
    w_core = jnp.transpose(weights_pool, (1, 2, 0, 3)).reshape(k, c_in, d * c_out)
    eye_b = jnp.eye(batch, dtype=jnp.float32)
    w_bd = jnp.einsum('bp,kij->kbipj', eye_b, w_core).reshape(
        k, batch * c_in, batch * d * c_out)
    bias_row = jnp.tile(bias_pool.reshape(1, d * c_out), (1, batch))   # (1, B*D*C_out)
    bias_rows = jnp.zeros((k, 1, batch * d * c_out), jnp.float32).at[0].set(bias_row)
    w_slabs = jnp.concatenate([w_bd, bias_rows], axis=1)   # (K, B*C_in+1, B*D*C_out)

    # emb_rep[n, b*D*C_out + d*C_out + o] = node_embeddings[n, d]
    emb_rep = jnp.tile(jnp.repeat(node_embeddings, c_out, axis=1), (1, batch))

    # ones-selector summing over d:  S[(b,d,o), (b',o')] = delta(b,b') * delta(o,o')
    sel = jnp.broadcast_to(
        jnp.einsum('bp,oq->bopq', eye_b, jnp.eye(c_out, dtype=jnp.float32))[:, None],
        (batch, d, c_out, batch, c_out),
    ).reshape(batch * d * c_out, batch * c_out)

    return w_slabs, emb_rep, sel


@functools.partial(jax.jit, static_argnames=('cheb_k',))
def agcn_forward(x, nodevec1, nodevec2, w_slabs, emb_rep, sel, *, cheb_k):
    b, n, c_in = x.shape
    c_out = sel.shape[1] // b

    # Per-call prep: one transpose/reshape of x + the constant ones column.
    x_t = jnp.transpose(x, (1, 0, 2)).reshape(n, b * c_in)       # (N, B*C_in)
    x_aug = jnp.concatenate([x_t, jnp.ones((n, 1), x_t.dtype)], axis=1)

    kernel = functools.partial(_agcn_kernel, cheb_k=cheb_k)
    vmem = lambda: pl.BlockSpec(memory_space=pltpu.MemorySpace.VMEM)
    out_flat = pl.pallas_call(
        kernel,
        out_shape=jax.ShapeDtypeStruct((n, b * c_out), jnp.float32),
        in_specs=[vmem() for _ in range(6)],
        out_specs=vmem(),
    )(x_aug, nodevec1, nodevec2, w_slabs, emb_rep, sel)
    return jnp.transpose(out_flat.reshape(n, b, c_out), (1, 0, 2))   # (B, N, C_out)


def agcn_reference(x, emb, nv1, nv2, wpool, bpool, cheb_k):
    """Pure-JAX reference mirroring the PyTorch forward exactly."""
    n = emb.shape[0]
    supports = jax.nn.softmax(jax.nn.relu(nv1 @ nv2), axis=1)
    support_set = [jnp.eye(n, dtype=jnp.float32), supports]
    for _ in range(2, cheb_k):
        support_set.append(2.0 * supports @ support_set[-1] - support_set[-2])
    sup = jnp.stack(support_set, axis=0)                         # (K, N, N)
    weights = jnp.einsum('nd,dkio->nkio', emb, wpool)            # (N, K, C_in, C_out)
    bias = emb @ bpool                                           # (N, C_out)
    x_g = jnp.einsum('knm,bmc->bknc', sup, x)                    # (B, K, N, C_in)
    x_g = jnp.transpose(x_g, (0, 2, 1, 3))                       # (B, N, K, C_in)
    return jnp.einsum('bnki,nkio->bno', x_g, weights) + bias     # (B, N, C_out)


if __name__ == "__main__":
    B, N, C_IN, C_OUT = 2, 16, 4, 32
    EMBED_DIM, CHEB_K, RANK = 8, 3, 10

    key = jax.random.PRNGKey(0)
    ks = jax.random.split(key, 6)
    x = jax.random.normal(ks[0], (B, N, C_IN), dtype=jnp.float32)
    node_embeddings = jax.random.normal(ks[1], (N, EMBED_DIM), dtype=jnp.float32)
    nodevec1 = jax.random.normal(ks[2], (N, RANK), dtype=jnp.float32)
    nodevec2 = jax.random.normal(ks[3], (RANK, N), dtype=jnp.float32)
    # Deterministic synthetic parameters (the nn.Parameter shapes from __init__):
    weights_pool = 0.1 * jax.random.normal(
        ks[4], (EMBED_DIM, CHEB_K, C_IN, C_OUT), dtype=jnp.float32)
    bias_pool = 0.1 * jax.random.normal(ks[5], (EMBED_DIM, C_OUT), dtype=jnp.float32)
    # adj_mx is stored but unused in the PyTorch forward; omitted here.

    # Parameter-derived prep: once, off the per-call path.
    w_slabs, emb_rep, sel = agcn_prepare(node_embeddings, weights_pool, bias_pool, B)
    w_slabs, emb_rep, sel = jax.block_until_ready((w_slabs, emb_rep, sel))

    out = agcn_forward(x, nodevec1, nodevec2, w_slabs, emb_rep, sel, cheb_k=CHEB_K)
    out = jax.block_until_ready(out)

    # Reference at full f32 matmul precision so the tolerance can be tight.
    with jax.default_matmul_precision("highest"):
        ref = agcn_reference(x, node_embeddings, nodevec1, nodevec2,
                             weights_pool, bias_pool, CHEB_K)
        ref = jax.block_until_ready(ref)

    assert out.shape == (B, N, C_OUT)
    assert jnp.allclose(out, ref, rtol=1e-3, atol=1e-3), "mismatch vs reference"

    print("KERNEL_OK")
</pallas_src>

<mosaic_0001>
module attributes {stable_mosaic.version = 11 : i64} {
  func.func @_agcn_kernel(%arg0: memref<16x9xf32, #tpu.memory_space<vmem>>, %arg1: memref<16x10xf32, #tpu.memory_space<vmem>>, %arg2: memref<10x16xf32, #tpu.memory_space<vmem>>, %arg3: memref<3x9x512xf32, #tpu.memory_space<vmem>>, %arg4: memref<16x512xf32, #tpu.memory_space<vmem>>, %arg5: memref<512x64xf32, #tpu.memory_space<vmem>>, %arg6: memref<16x64xf32, #tpu.memory_space<vmem>>) attributes {dimension_semantics = [], scalar_prefetch = 0 : i64, scratch_operands = 0 : i64, tpu.core_type = #tpu.core_type<tc>} {
    %c0 = arith.constant 0 : index
    %c0_0 = arith.constant 0 : index
    %0 = vector.load %arg1[%c0, %c0_0] : memref<16x10xf32, #tpu.memory_space<vmem>>, vector<16x10xf32>
    %c0_1 = arith.constant 0 : index
    %c0_2 = arith.constant 0 : index
    %1 = vector.load %arg2[%c0_1, %c0_2] : memref<10x16xf32, #tpu.memory_space<vmem>>, vector<10x16xf32>
    %cst = arith.constant dense<0.000000e+00> : vector<16x16xf32>
    %2 = tpu.matmul %0, %1, %cst {dimension_numbers = #tpu.dot_dimension_numbers<[1], [0], [0], [1], [0, 0, 1, 1], [], []>} : vector<16x10xf32>, vector<10x16xf32>, vector<16x16xf32> -> vector<16x16xf32>
    %cst_3 = arith.constant 0.000000e+00 : f32
    %3 = vector.broadcast %cst_3 : f32 to vector<16x16xf32>
    %4 = arith.maximumf %2, %3 : vector<16x16xf32>
    %cst_4 = arith.constant dense<0xFF800000> : vector<16xf32>
    %5 = vector.multi_reduction <maximumf>, %4, %cst_4 [1] : vector<16x16xf32> to vector<16xf32>
    %6 = vector.shape_cast %5 : vector<16xf32> to vector<16x1xf32>
    %7 = vector.broadcast %6 : vector<16x1xf32> to vector<16x16xf32>
    %8 = arith.subf %4, %7 : vector<16x16xf32>
    %9 = math.exp %8 : vector<16x16xf32>
    %cst_5 = arith.constant dense<0.000000e+00> : vector<16xf32>
    %10 = vector.multi_reduction <add>, %9, %cst_5 [1] : vector<16x16xf32> to vector<16xf32>
    %11 = vector.shape_cast %10 : vector<16xf32> to vector<16x1xf32>
    %12 = tpu.reciprocal %11 : vector<16x1xf32> -> vector<16x1xf32>
    %13 = vector.broadcast %12 : vector<16x1xf32> to vector<16x16xf32>
    %14 = arith.mulf %9, %13 : vector<16x16xf32>
    %c0_6 = arith.constant 0 : index
    %c0_7 = arith.constant 0 : index
    %15 = vector.load %arg0[%c0_6, %c0_7] : memref<16x9xf32, #tpu.memory_space<vmem>>, vector<16x9xf32>
    %c0_8 = arith.constant 0 : index
    %c0_9 = arith.constant 0 : index
    %c0_10 = arith.constant 0 : index
    %16 = vector.load %arg3[%c0_8, %c0_9, %c0_10] : memref<3x9x512xf32, #tpu.memory_space<vmem>>, vector<1x9x512xf32>
    %17 = vector.shape_cast %16 : vector<1x9x512xf32> to vector<9x512xf32>
    %cst_11 = arith.constant dense<0.000000e+00> : vector<16x512xf32>
    %18 = tpu.matmul %15, %17, %cst_11 {dimension_numbers = #tpu.dot_dimension_numbers<[1], [0], [0], [1], [0, 0, 1, 1], [], []>} : vector<16x9xf32>, vector<9x512xf32>, vector<16x512xf32> -> vector<16x512xf32>
    %cst_12 = arith.constant dense<0.000000e+00> : vector<16x9xf32>
    %19 = tpu.matmul %14, %15, %cst_12 {dimension_numbers = #tpu.dot_dimension_numbers<[1], [0], [0], [1], [0, 0, 1, 1], [], []>} : vector<16x16xf32>, vector<16x9xf32>, vector<16x9xf32> -> vector<16x9xf32>
    %c1 = arith.constant 1 : index
    %c0_13 = arith.constant 0 : index
    %c0_14 = arith.constant 0 : index
    %20 = vector.load %arg3[%c1, %c0_13, %c0_14] : memref<3x9x512xf32, #tpu.memory_space<vmem>>, vector<1x9x512xf32>
    %21 = vector.shape_cast %20 : vector<1x9x512xf32> to vector<9x512xf32>
    %cst_15 = arith.constant dense<0.000000e+00> : vector<16x512xf32>
    %22 = tpu.matmul %19, %21, %cst_15 {dimension_numbers = #tpu.dot_dimension_numbers<[1], [0], [0], [1], [0, 0, 1, 1], [], []>} : vector<16x9xf32>, vector<9x512xf32>, vector<16x512xf32> -> vector<16x512xf32>
    %23 = arith.addf %18, %22 : vector<16x512xf32>
    %24 = arith.addf %14, %14 : vector<16x16xf32>
    %cst_16 = arith.constant dense<0.000000e+00> : vector<16x9xf32>
    %25 = tpu.matmul %24, %19, %cst_16 {dimension_numbers = #tpu.dot_dimension_numbers<[1], [0], [0], [1], [0, 0, 1, 1], [], []>} : vector<16x16xf32>, vector<16x9xf32>, vector<16x9xf32> -> vector<16x9xf32>
    %26 = arith.subf %25, %15 : vector<16x9xf32>
    %c2 = arith.constant 2 : index
    %c0_17 = arith.constant 0 : index
    %c0_18 = arith.constant 0 : index
    %27 = vector.load %arg3[%c2, %c0_17, %c0_18] : memref<3x9x512xf32, #tpu.memory_space<vmem>>, vector<1x9x512xf32>
    %28 = vector.shape_cast %27 : vector<1x9x512xf32> to vector<9x512xf32>
    %cst_19 = arith.constant dense<0.000000e+00> : vector<16x512xf32>
    %29 = tpu.matmul %26, %28, %cst_19 {dimension_numbers = #tpu.dot_dimension_numbers<[1], [0], [0], [1], [0, 0, 1, 1], [], []>} : vector<16x9xf32>, vector<9x512xf32>, vector<16x512xf32> -> vector<16x512xf32>
    %30 = arith.addf %23, %29 : vector<16x512xf32>
    %c0_20 = arith.constant 0 : index
    %c0_21 = arith.constant 0 : index
    %31 = vector.load %arg4[%c0_20, %c0_21] : memref<16x512xf32, #tpu.memory_space<vmem>>, vector<16x512xf32>
    %32 = arith.mulf %31, %30 : vector<16x512xf32>
    %c0_22 = arith.constant 0 : index
    %c0_23 = arith.constant 0 : index
    %33 = vector.load %arg5[%c0_22, %c0_23] : memref<512x64xf32, #tpu.memory_space<vmem>>, vector<512x64xf32>
    %cst_24 = arith.constant dense<0.000000e+00> : vector<16x64xf32>
    %34 = tpu.matmul %32, %33, %cst_24 {dimension_numbers = #tpu.dot_dimension_numbers<[1], [0], [0], [1], [0, 0, 1, 1], [], []>} : vector<16x512xf32>, vector<512x64xf32>, vector<16x64xf32> -> vector<16x64xf32>
    %c0_25 = arith.constant 0 : index
    %c0_26 = arith.constant 0 : index
    %35 = vector.load %arg6[%c0_25, %c0_26] : memref<16x64xf32, #tpu.memory_space<vmem>>, vector<16x64xf32>
    tpu.vector_store %arg6[%c0_25, %c0_26], %34 {strides = array<i32>} : memref<16x64xf32, #tpu.memory_space<vmem>>, vector<16x64xf32>,
    return
  }
}

</mosaic_0001>

<bundles_post_ra>
// kernel: agcn_forward.1
= control target key start
LH: loop header
LB: loop body
LE: loop exit
PB: predicated region body
PF: predicated region fallthrough
CT: control target
= control target key end

     0   :  { %vm34_vm0 = vcmask 1041408   ;;  %vm27_vm1 = vcmask 80896   ;;  %vm63_vm2 = vcmask 130048   ;;  %vm167_vm3 = vcmask 1040384   ;;  %s1206_s2 = inlined_call_operand.vmem [shape: f32[10,16], index: 2, kind: input, shape index: {}]   ;;  %s1207_s1 = inlined_call_operand.vmem [shape: f32[16,10], index: 1, kind: input, shape index: {}]   ;;  %s1208_s0 = inlined_call_operand.vmem [shape: f32[16,9], index: 0, kind: input, shape index: {}]   ;;  %s1209_s3 = inlined_call_operand.vmem [shape: f32[3,9,512], index: 3, kind: input, shape index: {}]   ;;  %s1210_s5 = inlined_call_operand.vmem [shape: f32[512,64], index: 5, kind: input, shape index: {}]   ;;  %s1211_s4 = inlined_call_operand.vmem [shape: f32[16,512], index: 4, kind: input, shape index: {}]   ;;  %s1212_s6 = inlined_call_operand.vmem [shape: f32[16,64], index: 6, kind: output, shape index: {}]  }
   0x1   :  { %v26_v0 = vld [vmem:[%s1206_s2 + $0x8] sm:$0x3]  ;;  %v25_v1 = vld [vmem:[%s1206_s2] sm:$0xff]  ;;  %v732_v24 = vld [vmem:[%s1209_s3 + $0x70] sm:$0x1]  ;;  %vm160_vm12 = vcmask 72704  }
   0x2   :  { %721 = vmatpush.msk.msra.mxu0 %vm34_vm0, %v26_v0  ;;  %780 = vmatpush.msk.msra.mxu3 %vm34_vm0, %v26_v0  ;;  %v23_v2 = vld [vmem:[%s1207_s1] sm:$0xff]  ;;  %v24_v3 = vld [vmem:[%s1207_s1 + $0x8] sm:$0xff]  ;;  %v733_v25 = vld [vmem:[%s1209_s3 + $0x78] sm:$0x1]  ;;  %vm714_vm13 = vcmask 523264  }
   0x3   :  { %v844_v20 = vld [vmem:[%s1208_s0 + $0x8] sm:$0xff]  ;;  %v850_v21 = vld [vmem:[%s1208_s0] sm:$0xff]  ;;  %v728_v52 = vld [vmem:[%s1209_s3 + $0x50] sm:$0xff] }
   0x4   :  { %53 = vmatpush.msra.mxu0 %v25_v1  ;;  %781 = vmatpush.msra.mxu3 %v25_v1  ;;  %v730_v22 = vld [vmem:[%s1209_s3 + $0x60] sm:$0x1]  ;;  %v731_v23 = vld [vmem:[%s1209_s3 + $0x68] sm:$0x1]  ;;  %v729_v53 = vld [vmem:[%s1209_s3 + $0x58] sm:$0xff] }
   0x5   :  { %722 = vmatmul.msk.f32.vlgmr.msra.gmra.mxu0 %vm27_vm1, %v23_v2  ;;  %723 = vmatmul.msk.f32.vlgmr.msra.gmra.mxu3 %vm27_vm1, %v24_v3  ;;  %v726_v50 = vld [vmem:[%s1209_s3 + $0x40] sm:$0xff]  ;;  %v727_v51 = vld [vmem:[%s1209_s3 + $0x48] sm:$0xff]  ;;  %v120_v57 = vld [vmem:[%s1209_s3 + $0x30] sm:$0x1] }
   0x6   :  { %142 = vmatpush.msra.mxu1 %v844_v20  ;;  %734 = vmatpush.msk.msra.mxu2 %vm167_vm3, %v730_v22  ;;  %v118_v54 = vld [vmem:[%s1209_s3 + $0x20] sm:$0x1]  ;;  %v119_v56 = vld [vmem:[%s1209_s3 + $0x28] sm:$0x1]  ;;  %v121_v58 = vld [vmem:[%s1209_s3 + $0x38] sm:$0x1] }
   0x7   :  { %737 = vmatpush.msk.msrb.mxu3 %vm167_vm3, %v731_v23  ;;  %740 = vmatpush.msk.msrb.mxu0 %vm167_vm3, %v732_v24  ;;  %v114_v55 = vld [vmem:[%s1209_s3] sm:$0xff]  ;;  %v115_v59 = vld [vmem:[%s1209_s3 + $0x8] sm:$0xff]  ;;  %v116_v60 = vld [vmem:[%s1209_s3 + $0x10] sm:$0xff] }
   0x8   :  { %143 = vmatpush.msra.mxu1 %v850_v21  ;;  %195 = vmatpush.msra.mxu2 %v726_v50  ;;  %v117_v61 = vld [vmem:[%s1209_s3 + $0x18] sm:$0xff]  ;;  %v764_v2 = vld [vmem:[%s1209_s3 + $0xa0] sm:$0x1]  ;;  %v572_v22 = vld [vmem:[%s1210_s5 + $0x70] sm:$0xff] }
   0x9   :  { %218 = vmatpush.msrb.mxu3 %v727_v51  ;;  %241 = vmatpush.msrb.mxu0 %v728_v52  ;;  %v767_v3 = vld [vmem:[%s1209_s3 + $0xb8] sm:$0x1]  ;;  %v586_v24 = vld [vmem:[%s1210_s5 + $0xe0] sm:$0xff]  ;;  %v580_v52 = vld [vmem:[%s1210_s5 + $0xb0] sm:$0xff] }
   0xa   :  { %743 = vmatpush.msk.msrb.mxu1 %vm167_vm3, %v733_v25  ;;  %746 = vmatpush.msk.msrb.mxu2 %vm167_vm3, %v118_v54  ;;  %v602_v25 = vld [vmem:[%s1210_s5 + $0x160] sm:$0xff]  ;;  %v565_v54 = vld [vmem:[%s1210_s5 + $0x38] sm:$0xff] }
   0xb   :  { %749 = vmatpush.msk.msra.mxu3 %vm167_vm3, %v119_v56  ;;  %752 = vmatpush.msk.msra.mxu0 %vm167_vm3, %v120_v57  ;;  %v566_v50 = vld [vmem:[%s1210_s5 + $0x40] sm:$0xff]  ;;  %v579_v56 = vld [vmem:[%s1210_s5 + $0xa8] sm:$0xff] }
   0xc   :  { %264 = vmatpush.msrb.mxu1 %v729_v53  ;;  %305 = vmatpush.msrb.mxu2 %v114_v55  ;;  %v614_v51 = vld [vmem:[%s1210_s5 + $0x1c0] sm:$0xff]  ;;  %v596_v53 = vld [vmem:[%s1210_s5 + $0x130] sm:$0xff]  ;;  %v613_v55 = vld [vmem:[%s1210_s5 + $0x1b8] sm:$0xff] }
   0xd   :  { %328 = vmatpush.msra.mxu3 %v115_v59  ;;  %351 = vmatpush.msra.mxu0 %v116_v60  ;;  %v595_v57 = vld [vmem:[%s1210_s5 + $0x128] sm:$0xff]  ;;  %v612_v59 = vld [vmem:[%s1210_s5 + $0x1b0] sm:$0xff] }
  0x82   :  { %v55_v4 = vpop.f32.mrf.mxu0 }
  0x83   :  { %v61_v5 = vmax.f32 %v55_v4, 0.0  ;;  %v760_v4 = vld [vmem:[%s1209_s3 + $0x80] sm:$0xff] }
  0x85   :  { %v64_v6 = vsel %vm63_vm2, %v61_v5, -inf }
  0x86   :  { %65 = vmax.xlane.f32.xlu0 %v64_v6  ;;  %v763_v6 = vld [vmem:[%s1209_s3 + $0x98] sm:$0xff] }
  0x88   :  { %v58_v7 = vpop.f32.mrf.mxu3 }
  0x89   :  { %v62_v8 = vmax.f32 %v58_v7, 0.0 }
  0x8b   :  { %v67_v9 = vsel %vm63_vm2, %v62_v8, -inf }
  0x8e   :  { %68 = vmax.xlane.f32.xlu0 %v67_v9  ;;  %v761_v9 = vld [vmem:[%s1209_s3 + $0x88] sm:$0xff] }
  0xf9   :  { %v66_v10 = vpop.xlane.xlu0 %65 }
  0xfa   :  { %v70_v11 = vsub.f32 %v61_v5, %v66_v10  ;;  %v765_v5 = vld [vmem:[%s1209_s3 + $0xa8] sm:$0x1]  ;;  %v762_v10 = vld [vmem:[%s1209_s3 + $0x90] sm:$0xff] }
  0xfc   :  { %v72_v12 = vmul.f32 1.442695, %v70_v11 }
  0xfe   :  { %782 = vpow2.f32 %v72_v12  ;;  %v589_v12 = vld [vmem:[%s1210_s5 + $0xf8] sm:$0xff] }
 0x101   :  { %v69_v13 = vpop.xlane.xlu0 %68 }
 0x102   :  { %v71_v14 = vsub.f32 %v62_v8, %v69_v13  ;;  %v766_v8 = vld [vmem:[%s1209_s3 + $0xb0] sm:$0x1]  ;;  %v605_v13 = vld [vmem:[%s1210_s5 + $0x178] sm:$0xff] }
 0x104   :  { %v783_v15 = vpop.eup %782  ;;  %v74_v16 = vmul.f32 1.442695, %v71_v14  ;;  %v588_v14 = vld [vmem:[%s1210_s5 + $0xf0] sm:$0xff] }
 0x105   :  { %v76_v17 = vsel %vm63_vm2, %v783_v15, 0.0 }
 0x106   :  { %784 = vpow2.f32 %v74_v16  ;;  %77 = vadd.xlane.f32.xlu1 %v76_v17  ;;  %v587_v16 = vld [vmem:[%s1210_s5 + $0xe8] sm:$0xff] }
 0x107   :  { %v603_v17 = vld [vmem:[%s1210_s5 + $0x168] sm:$0xff] }
 0x10c   :  { %v785_v18 = vpop.eup %784 }
 0x10d   :  { %v79_v19 = vsel %vm63_vm2, %v785_v18, 0.0 }
 0x10e   :  { %80 = vadd.xlane.f32.xlu1 %v79_v19  ;;  %v621_v19 = vld [vmem:[%s1210_s5 + $0x1f8] sm:$0xff] }
 0x179   :  { %v78_v26 = vpop.xlane.xlu1 %77 }
 0x17a   :  { %786 = vrcp.f32 %v78_v26  ;;  %v93_v31 = vand.u32 2147483648, %v78_v26  ;;  %v91_v33 = vand.u32 2147483647, %v78_v26  ;;  %vm87_vm5 = vweird.f32 %v78_v26 }
 0x17c   :  { %v94_v36 = vor.u32 1.1754944e-38, %v93_v31  ;;  %vm92_vm7 = vcmp.eq.f32.partialorder %v91_v33, 8.507059e+37  ;;  %v601_v31 = vld [vmem:[%s1210_s5 + $0x158] sm:$0xff]  ;;  %v618_v33 = vld [vmem:[%s1210_s5 + $0x1e0] sm:$0xff] }
 0x180   :  { %v787_v27 = vpop.eup %786 }
 0x181   :  { %v83_v28 = vmul.f32 %v787_v27, %v78_v26  ;;  %v81_v29 = vpop.xlane.xlu1 %80  ;;  %vm88_vm4 = vweird.f32 %v787_v27  ;;  %v620_v26 = vld [vmem:[%s1210_s5 + $0x1f0] sm:$0xff] }
 0x182   :  { %788 = vrcp.f32 %v81_v29  ;;  %vm89_vm6 = vmor %vm87_vm5, %vm88_vm4  ;;  %v107_v42 = vand.u32 2147483648, %v81_v29  ;;  %v105_v44 = vand.u32 2147483647, %v81_v29  ;;  %vm101_vm9 = vweird.f32 %v81_v29 }
 0x183   :  { %v84_v30 = vsub.f32 1.0, %v83_v28  ;;  %v571_v28 = vld [vmem:[%s1210_s5 + $0x68] sm:$0xff] }
 0x184   :  { %v108_v46 = vor.u32 1.1754944e-38, %v107_v42  ;;  %vm106_vm11 = vcmp.eq.f32.partialorder %v105_v44, 8.507059e+37  ;;  %v598_v44 = vld [vmem:[%s1210_s5 + $0x140] sm:$0xff] }
 0x185   :  { %v85_v32 = vmul.f32 %v787_v27, %v84_v30  ;;  %v585_v30 = vld [vmem:[%s1210_s5 + $0xd8] sm:$0xff] }
 0x187   :  { %v86_v34 = vadd.f32 %v787_v27, %v85_v32  ;;  %v570_v32 = vld [vmem:[%s1210_s5 + $0x60] sm:$0xff] }
 0x188   :  { %v789_v35 = vpop.eup %788 }
 0x189   :  { %v97_v37 = vmul.f32 %v789_v35, %v81_v29  ;;  %v90_v38 = vsel %vm89_vm6, %v787_v27, %v86_v34  ;;  %vm102_vm8 = vweird.f32 %v789_v35  ;;  %v619_v29 = vld [vmem:[%s1210_s5 + $0x1e8] sm:$0xff]  ;;  %v584_v34 = vld [vmem:[%s1210_s5 + $0xd0] sm:$0xff] }
 0x18a   :  { %v95_v39 = vsel %vm92_vm7, %v94_v36, %v90_v38  ;;  %vm103_vm10 = vmor %vm101_vm9, %vm102_vm8  ;;  %v569_v36 = vld [vmem:[%s1210_s5 + $0x58] sm:$0xff]  ;;  %v583_v38 = vld [vmem:[%s1210_s5 + $0xc8] sm:$0xff] }
 0x18b   :  { %v98_v40 = vsub.f32 1.0, %v97_v37  ;;  %v110_v41 = vmul.f32 %v783_v15, %v95_v39  ;;  %v604_v15 = vld [vmem:[%s1210_s5 + $0x170] sm:$0xff]  ;;  %v617_v37 = vld [vmem:[%s1210_s5 + $0x1d8] sm:$0xff]  ;;  %v599_v39 = vld [vmem:[%s1210_s5 + $0x148] sm:$0xff] }
 0x18d   :  { %v99_v43 = vmul.f32 %v789_v35, %v98_v40  ;;  %724 = vmatmul.msk.f32.vlgmr.msra.gmra.mxu1 %vm63_vm2, %v110_v41  ;;  %v382_v0 = vadd.f32 %v110_v41, %v110_v41  ;;  %v568_v40 = vld [vmem:[%s1210_s5 + $0x50] sm:$0xff] }
 0x18e   :  { %755 = vmatpush.msk.msra.mxu1 %vm167_vm3, %v121_v58  ;;  %v616_v41 = vld [vmem:[%s1210_s5 + $0x1d0] sm:$0xff] }
 0x18f   :  { %v100_v45 = vadd.f32 %v789_v35, %v99_v43  ;;  %v582_v43 = vld [vmem:[%s1210_s5 + $0xc0] sm:$0xff]  ;;  %v564_v58 = vld [vmem:[%s1210_s5 + $0x30] sm:$0xff] }
 0x190   :  { %374 = vmatpush.msra.mxu1 %v117_v61 }
 0x191   :  { %v104_v47 = vsel %vm103_vm10, %v789_v35, %v100_v45  ;;  %v600_v35 = vld [vmem:[%s1210_s5 + $0x150] sm:$0xff] }
 0x192   :  { %v109_v48 = vsel %vm106_vm11, %v108_v46, %v104_v47  ;;  %v567_v46 = vld [vmem:[%s1210_s5 + $0x48] sm:$0xff] }
 0x193   :  { %v111_v49 = vmul.f32 %v785_v18, %v109_v48  ;;  %v573_v18 = vld [vmem:[%s1210_s5 + $0x78] sm:$0xff]  ;;  %v615_v47 = vld [vmem:[%s1210_s5 + $0x1c8] sm:$0xff] }
 0x194   :  { %v581_v48 = vld [vmem:[%s1210_s5 + $0xb8] sm:$0xff] }
 0x195   :  { %725 = vmatmul.msk.f32.gmra.mxu1 %vm63_vm2, %v111_v49  ;;  %v383_v1 = vadd.f32 %v111_v49, %v111_v49  ;;  %v597_v49 = vld [vmem:[%s1210_s5 + $0x138] sm:$0xff] }
 0x20a   :  { %v145_v62 = vpop.f32.mrf.mxu1 }
 0x20b   :  { %735 = vmatmul.msk.f32.vlgmr.msra.gmra.mxu2 %vm160_vm12, %v145_v62  ;;  %738 = vmatmul.msk.f32.vlgmr.msrb.gmra.mxu3 %vm160_vm12, %v145_v62 }
 0x20c   :  { %741 = vmatmul.msk.f32.vlgmr.msrb.gmra.mxu0 %vm160_vm12, %v145_v62  ;;  %744 = vmatmul.msk.f32.vlgmr.msrb.gmra.mxu1 %vm160_vm12, %v145_v62 }
 0x20d   :  { %768 = vmatpush.msk.msrb.mxu3 %vm167_vm3, %v764_v2  ;;  %771 = vmatpush.msk.msrb.mxu0 %vm167_vm3, %v765_v5 }
 0x20e   :  { %774 = vmatpush.msk.msrb.mxu1 %vm167_vm3, %v766_v8  ;;  %v611_v8 = vld [vmem:[%s1210_s5 + $0x1a8] sm:$0xff] }
 0x20f   :  { %457 = vmatpush.msrb.mxu3 %v760_v4  ;;  %480 = vmatpush.msrb.mxu0 %v761_v9  ;;  %v562_v9 = vld [vmem:[%s1210_s5 + $0x20] sm:$0xff] }
 0x210   :  { %503 = vmatpush.msrb.mxu1 %v762_v10  ;;  %v575_v10 = vld [vmem:[%s1210_s5 + $0x88] sm:$0xff] }
 0x212   :  { %v148_v63 = vpop.f32.mrf.mxu1 }
 0x213   :  { %736 = vmatmul.msk.f32.gmra.mxu2 %vm160_vm12, %v148_v63  ;;  %739 = vmatmul.msk.f32.gmra.mxu3 %vm160_vm12, %v148_v63 }
 0x214   :  { %742 = vmatmul.msk.f32.gmra.mxu0 %vm160_vm12, %v148_v63  ;;  %745 = vmatmul.msk.f32.gmra.mxu1 %vm160_vm12, %v148_v63 }
 0x215   :  { %404 = vmatpush.msra.mxu2 %v148_v63  ;;  %v594_v63 = vld [vmem:[%s1210_s5 + $0x120] sm:$0xff] }
 0x217   :  { %405 = vmatpush.msra.mxu2 %v145_v62  ;;  %v578_v62 = vld [vmem:[%s1210_s5 + $0xa0] sm:$0xff] }
 0x21b   :  { %747 = vmatmul.msk.f32.vlgmr.msrb.gmra.mxu2 %vm160_vm12, %v850_v21  ;;  %750 = vmatmul.msk.f32.vlgmr.msra.gmra.mxu3 %vm160_vm12, %v850_v21 }
 0x21c   :  { %753 = vmatmul.msk.f32.vlgmr.msra.gmra.mxu0 %vm160_vm12, %v850_v21  ;;  %756 = vmatmul.msk.f32.vlgmr.msra.gmra.mxu1 %vm160_vm12, %v850_v21 }
 0x21d   :  { %777 = vmatpush.msk.msrb.mxu2 %vm167_vm3, %v767_v3  ;;  %645 = vmatpush.msra.mxu0 %v589_v12  ;;  %v591_v12 = vld [vmem:[%s1210_s5 + $0x108] sm:$0xff] }
 0x21e   :  { %668 = vmatpush.msra.mxu1 %v605_v13  ;;  %622 = vmatpush.msra.mxu3 %v573_v18  ;;  %v610_v13 = vld [vmem:[%s1210_s5 + $0x1a0] sm:$0xff]  ;;  %v609_v18 = vld [vmem:[%s1210_s5 + $0x198] sm:$0xff] }
 0x21f   :  { %526 = vmatpush.msrb.mxu2 %v763_v6  ;;  %646 = vmatpush.msra.mxu0 %v588_v14  ;;  %v563_v6 = vld [vmem:[%s1210_s5 + $0x28] sm:$0xff]  ;;  %v561_v14 = vld [vmem:[%s1210_s5 + $0x18] sm:$0xff] }
 0x220   :  { %669 = vmatpush.msra.mxu1 %v604_v15  ;;  %623 = vmatpush.msra.mxu3 %v572_v22  ;;  %v608_v22 = vld [vmem:[%s1210_s5 + $0x190] sm:$0xff] }
 0x221   :  { %647 = vmatpush.msra.mxu0 %v587_v16  ;;  %v574_v16 = vld [vmem:[%s1210_s5 + $0x80] sm:$0xff] }
 0x222   :  { %670 = vmatpush.msra.mxu1 %v603_v17  ;;  %624 = vmatpush.msra.mxu3 %v571_v28  ;;  %v590_v17 = vld [vmem:[%s1210_s5 + $0x100] sm:$0xff] }
 0x223   :  { %748 = vmatmul.msk.f32.gmra.mxu2 %vm160_vm12, %v844_v20  ;;  %751 = vmatmul.msk.f32.gmra.mxu3 %vm160_vm12, %v844_v20  ;;  %v606_v28 = vld [vmem:[%s1210_s5 + $0x180] sm:$0xff] }
 0x224   :  { %754 = vmatmul.msk.f32.gmra.mxu0 %vm160_vm12, %v844_v20  ;;  %757 = vmatmul.msk.f32.gmra.mxu1 %vm160_vm12, %v844_v20 }
 0x225   :  { %648 = vmatpush.msra.mxu0 %v586_v24  ;;  %671 = vmatpush.msra.mxu1 %v602_v25  ;;  %v607_v24 = vld [vmem:[%s1210_s5 + $0x188] sm:$0xff] }
 0x226   :  { %625 = vmatpush.msra.mxu3 %v570_v32 }
 0x227   :  { %649 = vmatpush.msra.mxu0 %v585_v30  ;;  %672 = vmatpush.msra.mxu1 %v601_v31 }
 0x228   :  { %626 = vmatpush.msra.mxu3 %v569_v36 }
 0x229   :  { %650 = vmatpush.msra.mxu0 %v584_v34  ;;  %673 = vmatpush.msra.mxu1 %v600_v35 }
 0x22a   :  { %627 = vmatpush.msra.mxu3 %v568_v40 }
 0x22b   :  { %758 = vmatmul.msk.f32.vlgmr.msra.gmra.mxu2 %vm63_vm2, %v382_v0  ;;  %651 = vmatpush.msra.mxu0 %v583_v38  ;;  %v593_v0 = vld [vmem:[%s1210_s5 + $0x118] sm:$0xff]  ;;  %v543_v38 = vld [vmem:[%s1211_s4 + $0x8] sm:$0xff] }
 0x22c   :  { %691 = vmatpush.msra.mxu2 %v621_v19  ;;  %674 = vmatpush.msra.mxu1 %v599_v39  ;;  %v560_v19 = vld [vmem:[%s1210_s5 + $0x10] sm:$0xff] }
 0x22d   :  { %652 = vmatpush.msra.mxu0 %v582_v43  ;;  %628 = vmatpush.msra.mxu3 %v567_v46 }
 0x22e   :  { %692 = vmatpush.msra.mxu2 %v620_v26  ;;  %675 = vmatpush.msra.mxu1 %v598_v44  ;;  %v558_v26 = vld [vmem:[%s1210_s5] sm:$0xff] }
 0x22f   :  { %653 = vmatpush.msra.mxu0 %v581_v48  ;;  %629 = vmatpush.msra.mxu3 %v566_v50  ;;  %v542_v48 = vld [vmem:[%s1211_s4] sm:$0xff] }
 0x230   :  { %693 = vmatpush.msra.mxu2 %v619_v29  ;;  %676 = vmatpush.msra.mxu1 %v597_v49 }
 0x231   :  { %654 = vmatpush.msra.mxu0 %v580_v52  ;;  %630 = vmatpush.msra.mxu3 %v565_v54  ;;  %v545_v52 = vld [vmem:[%s1211_s4 + $0x18] sm:$0xff] }
 0x232   :  { %694 = vmatpush.msra.mxu2 %v618_v33  ;;  %677 = vmatpush.msra.mxu1 %v596_v53 }
 0x233   :  { %759 = vmatmul.msk.f32.gmra.mxu2 %vm63_vm2, %v383_v1  ;;  %655 = vmatpush.msra.mxu0 %v579_v56  ;;  %v547_v56 = vld [vmem:[%s1211_s4 + $0x28] sm:$0xff] }
 0x234   :  { %695 = vmatpush.msra.mxu2 %v617_v37  ;;  %678 = vmatpush.msra.mxu1 %v595_v57 }
 0x235   :  { %631 = vmatpush.msra.mxu3 %v564_v58  ;;  %656 = vmatpush.msra.mxu0 %v578_v62 }
 0x236   :  { %696 = vmatpush.msra.mxu2 %v616_v41  ;;  %679 = vmatpush.msra.mxu1 %v594_v63  ;;  %v544_v41 = vld [vmem:[%s1211_s4 + $0x10] sm:$0xff] }
 0x237   :  { %632 = vmatpush.msra.mxu3 %v563_v6 }
 0x238   :  { %697 = vmatpush.msra.mxu2 %v615_v47  ;;  %680 = vmatpush.msra.mxu1 %v593_v0 }
 0x239   :  { %633 = vmatpush.msra.mxu3 %v562_v9 }
 0x23a   :  { %698 = vmatpush.msra.mxu2 %v614_v51 }
 0x23b   :  { %634 = vmatpush.msra.mxu3 %v561_v14 }
 0x23c   :  { %699 = vmatpush.msra.mxu2 %v613_v55 }
 0x23d   :  { %635 = vmatpush.msra.mxu3 %v560_v19 }
 0x23e   :  { %700 = vmatpush.msra.mxu2 %v612_v59 }
 0x240   :  { %701 = vmatpush.msra.mxu2 %v611_v8 }
 0x242   :  { %702 = vmatpush.msra.mxu2 %v610_v13 }
 0x244   :  { %703 = vmatpush.msra.mxu2 %v609_v18 }
 0x246   :  { %704 = vmatpush.msra.mxu2 %v608_v22 }
 0x248   :  { %705 = vmatpush.msra.mxu2 %v607_v24 }
 0x24a   :  { %706 = vmatpush.msra.mxu2 %v606_v28 }
 0x289   :  { %v243_v3 = vpop.f32.mrf.mxu0  ;;  %v266_v4 = vpop.f32.mrf.mxu1 }
 0x28e   :  { %v197_v7 = vpop.f32.mrf.mxu2  ;;  %v220_v5 = vpop.f32.mrf.mxu3 }
 0x291   :  { %v1144_v15 = vpop.f32.mrf.mxu1 }
 0x296   :  { %v200_v11 = vpop.f32.mrf.mxu2  ;;  %v223_v25 = vpop.f32.mrf.mxu3 }
 0x299   :  { %v376_v30 = vpop.f32.mrf.mxu1 }
 0x29a   :  { %v377_v46 = vadd.f32 %v376_v30, %v266_v4  ;;  %v549_v4 = vld [vmem:[%s1211_s4 + $0x38] sm:$0xff] }
 0x29e   :  { %v307_v23 = vpop.f32.mrf.mxu2  ;;  %v330_v31 = vpop.f32.mrf.mxu3 }
 0x29f   :  { %v1001_v27 = vadd.f32 %v307_v23, %v197_v7  ;;  %v576_v7 = vld [vmem:[%s1210_s5 + $0x90] sm:$0xff]  ;;  %v559_v23 = vld [vmem:[%s1210_s5 + $0x8] sm:$0xff]  ;;  %v331_v35 = vadd.f32 %v330_v31, %v220_v5 }
 0x2a0   :  { %636 = vmatpush.msra.mxu3 %v559_v23 }
 0x2a1   :  { %v379_v33 = vpop.f32.mrf.mxu1 }
 0x2a2   :  { %637 = vmatpush.msra.mxu3 %v558_v26 }
 0x2a6   :  { %v310_v42 = vpop.f32.mrf.mxu2  ;;  %v333_v34 = vpop.f32.mrf.mxu3 }
 0x2a7   :  { %v1051_v45 = vadd.f32 %v310_v42, %v200_v11  ;;  %v246_v11 = vpop.f32.mrf.mxu0  ;;  %v334_v49 = vadd.f32 %v333_v34, %v223_v25 }
 0x2ae   :  { %v407_v60 = vpop.f32.mrf.mxu2 }
 0x2af   :  { %v413_v61 = vsub.f32 %v407_v60, %v850_v21  ;;  %v577_v21 = vld [vmem:[%s1210_s5 + $0x98] sm:$0xff]  ;;  %v353_v29 = vpop.f32.mrf.mxu0  ;;  %v548_v60 = vld [vmem:[%s1211_s4 + $0x30] sm:$0xff] }
 0x2b0   :  { %657 = vmatpush.msra.mxu0 %v577_v21  ;;  %v354_v36 = vadd.f32 %v353_v29, %v243_v3  ;;  %v380_v21 = vadd.f32 %v379_v33, %v1144_v15 }
 0x2b1   :  { %769 = vmatmul.msk.f32.vlgmr.msrb.gmra.mxu3 %vm160_vm12, %v413_v61  ;;  %772 = vmatmul.msk.f32.vlgmr.msrb.gmra.mxu0 %vm160_vm12, %v413_v61 }
 0x2b2   :  { %775 = vmatmul.msk.f32.vlgmr.msrb.gmra.mxu1 %vm160_vm12, %v413_v61  ;;  %778 = vmatmul.msk.f32.vlgmr.msrb.gmra.mxu2 %vm160_vm12, %v413_v61 }
 0x2b3   :  { %658 = vmatpush.msra.mxu0 %v576_v7 }
 0x2b5   :  { %659 = vmatpush.msra.mxu0 %v575_v10 }
 0x2b6   :  { %v410_v1 = vpop.f32.mrf.mxu2 }
 0x2b7   :  { %v414_v2 = vsub.f32 %v410_v1, %v844_v20  ;;  %v592_v20 = vld [vmem:[%s1210_s5 + $0x110] sm:$0xff]  ;;  %660 = vmatpush.msra.mxu0 %v574_v16  ;;  %v356_v32 = vpop.f32.mrf.mxu0  ;;  %v546_v1 = vld [vmem:[%s1211_s4 + $0x20] sm:$0xff] }
 0x2b8   :  { %681 = vmatpush.msra.mxu1 %v592_v20  ;;  %v357_v53 = vadd.f32 %v356_v32, %v246_v11 }
 0x2b9   :  { %770 = vmatmul.msk.f32.gmra.mxu3 %vm160_vm12, %v414_v2  ;;  %773 = vmatmul.msk.f32.gmra.mxu0 %vm160_vm12, %v414_v2 }
 0x2ba   :  { %776 = vmatmul.msk.f32.gmra.mxu1 %vm160_vm12, %v414_v2  ;;  %779 = vmatmul.msk.f32.gmra.mxu2 %vm160_vm12, %v414_v2 }
 0x2bb   :  { %682 = vmatpush.msra.mxu1 %v591_v12 }
 0x2bd   :  { %683 = vmatpush.msra.mxu1 %v590_v17 }
 0x32e   :  { %v482_v37 = vpop.f32.mrf.mxu0 }
 0x32f   :  { %v535_v39 = vadd.f32 %v482_v37, %v331_v35  ;;  %v505_v40 = vpop.f32.mrf.mxu1 }
 0x330   :  { %v536_v42 = vadd.f32 %v505_v40, %v354_v36 }
 0x331   :  { %v551_v43 = vmul.f32 %v543_v38, %v535_v39 }
 0x332   :  { %v552_v44 = vmul.f32 %v544_v41, %v536_v42 }
 0x333   :  { %661 = vmatmul.f32.vlgmr.msra.gmra.mxu0 %v551_v43 }
 0x334   :  { %684 = vmatmul.f32.vlgmr.msra.gmra.mxu1 %v552_v44  ;;  %v459_v47 = vpop.f32.mrf.mxu3 }
 0x335   :  { %v534_v50 = vadd.f32 %v459_v47, %v1001_v27  ;;  %v528_v51 = vpop.f32.mrf.mxu2 }
 0x336   :  { %v537_v54 = vadd.f32 %v528_v51, %v377_v46  ;;  %v485_v55 = vpop.f32.mrf.mxu0 }
 0x337   :  { %v550_v57 = vmul.f32 %v542_v48, %v534_v50  ;;  %v539_v58 = vadd.f32 %v485_v55, %v334_v49  ;;  %v508_v59 = vpop.f32.mrf.mxu1 }
 0x338   :  { %v553_v27 = vmul.f32 %v545_v52, %v537_v54  ;;  %v540_v61 = vadd.f32 %v508_v59, %v357_v53 }
 0x339   :  { %638 = vmatmul.f32.vlgmr.msra.gmra.mxu3 %v550_v57  ;;  %v555_v62 = vmul.f32 %v547_v56, %v539_v58 }
 0x33a   :  { %707 = vmatmul.f32.vlgmr.msra.gmra.mxu2 %v553_v27  ;;  %v556_v63 = vmul.f32 %v548_v60, %v540_v61 }
 0x33b   :  { %664 = vmatmul.f32.gmra.mxu0 %v555_v62 }
 0x33c   :  { %687 = vmatmul.f32.gmra.mxu1 %v556_v63  ;;  %v462_v0 = vpop.f32.mrf.mxu3 }
 0x33d   :  { %v538_v2 = vadd.f32 %v462_v0, %v1051_v45  ;;  %v531_v3 = vpop.f32.mrf.mxu2 }
 0x33e   :  { %v541_v5 = vadd.f32 %v531_v3, %v380_v21 }
 0x33f   :  { %v554_v6 = vmul.f32 %v546_v1, %v538_v2 }
 0x340   :  { %v557_v7 = vmul.f32 %v549_v4, %v541_v5 }
 0x341   :  { %641 = vmatmul.f32.gmra.mxu3 %v554_v6 }
 0x342   :  { %710 = vmatmul.f32.gmra.mxu2 %v557_v7 }
 0x3b0   :  { %v662_v20 = vpop.f32.mrf.mxu0 }
 0x3b1   :  { %v685_v8 = vpop.f32.mrf.mxu1 }
 0x3b8   :  { %v665_v45 = vpop.f32.mrf.mxu0 }
 0x3b9   :  { %v688_v16 = vpop.f32.mrf.mxu1 }
 0x3bc   :  { %v639_v9 = vpop.f32.mrf.mxu3 }
 0x3bd   :  { %v663_v10 = vadd.f32 %v662_v20, %v639_v9  ;;  %v708_v11 = vpop.f32.mrf.mxu2 }
 0x3bf   :  { %v686_v12 = vadd.f32 %v685_v8, %v663_v10 }
 0x3c1   :  { %v709_v13 = vadd.f32 %v708_v11, %v686_v12 }
 0x3c3   :  { %715 = vst.msk [vmem:[%s1212_s6] sm:$0xff] %vm714_vm13, %v709_v13 }
 0x3c4   :  { %v642_v14 = vpop.f32.mrf.mxu3 }
 0x3c5   :  { %v666_v15 = vadd.f32 %v665_v45, %v642_v14  ;;  %v711_v18 = vpop.f32.mrf.mxu2 }
 0x3c7   :  { %v689_v17 = vadd.f32 %v688_v16, %v666_v15 }
 0x3c9   :  { %v712_v19 = vadd.f32 %v711_v18, %v689_v17 }
 0x3cb   :  { %716 = vst.msk [vmem:[%s1212_s6 + $0x8] sm:$0xff] %vm714_vm13, %v712_v19 }

</bundles_post_ra>
